<compile_context>
chip_gen: v7x
topology: tpu7x:2x2x1
jax: 0.10.0
libtpu: 0.0.40
codegen_flags: <defaults>
</compile_context>

<pallas_src>
import functools

import numpy as np
import jax
import jax.numpy as jnp
from jax.experimental import pallas as pl
from jax.experimental.pallas import tpu as pltpu


def _make_dense_kernel(x_ref, w_ref, m_ref, o_ref, *,
                       H, W, Cin, Cout, K, pad, n_local):
    """One grid step processes n_local images.

    x_ref : (n_local, Cin, H*W)        inputs, spatial dims flattened (lane-dense)
    w_ref : (Cout, K*K*Cin)            conv weights, reduction idx = (kh*K+kw)*Cin + ci
    m_ref : (K*K, H*W) f32             0/1 validity mask per tap (H- and W-edge padding)
    o_ref : (n_local, Cin+Cout, H*W)   concat([x, relu(conv(x))]) along channels
    """
    HW = H * W
    w = w_ref[...]          # (Cout, KKC) -- resident (constant index_map)
    masks = m_ref[...]      # (K*K, HW)   -- resident (constant index_map)

    outs = []
    for n in range(n_local):                       # n_local is tiny & static
        xs = x_ref[n]                              # (Cin, HW)
        # Build the im2col operand as a register value: 9 lane-rotated copies of xs
        # with out-of-image (padding) positions zeroed by the precomputed tap mask.
        # pltpu.roll runs on the XLU (vector-extended slot), so it does not compete
        # with the load/store or VALU slots.
        pieces = []
        for kh in range(K):
            for kw in range(K):
                t = kh * K + kw
                s = (kh - pad) * W + (kw - pad)    # flattened tap shift
                if s == 0:
                    pieces.append(xs)              # center tap: mask is all-ones
                else:
                    r = pltpu.roll(xs, (-s) % HW, axis=1)
                    pieces.append(r * masks[t:t + 1, :])
        col = jnp.concatenate(pieces, axis=0)      # (K*K*Cin, HW)

        # One MXU GEMM over the whole K*K*Cin contraction with f32 accumulation.
        # (For scaled-up Cin/Cout cast operands to bf16 here, keep f32 accumulation.)
        acc = jnp.dot(w, col, preferred_element_type=jnp.float32)

        # Fused channel concat, kept in registers until the single block store.
        outs.append(jnp.concatenate(
            [xs.astype(jnp.float32), jnp.maximum(acc, 0.0)], axis=0))  # (Cin+Cout, HW)

    # Single lane-dense full-block store.
    o_ref[...] = jnp.stack(outs, axis=0).astype(o_ref.dtype)


def _grid_steps(batch):
    """2 grid steps on a 2-TensorCore chip (v7x) so both cores get work, else 1."""
    n_cores = 1
    try:
        if "v7" in jax.devices()[0].device_kind.lower():
            n_cores = 2
    except Exception:
        pass
    return n_cores if (batch % n_cores == 0 and batch >= n_cores) else 1


def make_dense_forward(x_nchw, w_oihw):
    """Pallas equivalent of make_dense.forward. x: (N, Cin, H, W); w: (Cout, Cin, K, K)."""
    N, Cin, H, W = x_nchw.shape
    Cout, _, K, _ = w_oihw.shape
    pad = (K - 1) // 2                  # same formula the PyTorch module uses
    HW = H * W
    KKC = K * K * Cin

    G = _grid_steps(N)
    n_local = N // G

    # Free, layout-identical reshape (row-major collapse of H, W).
    x_flat = x_nchw.reshape(N, Cin, HW)
    # One-time tiny weight repack: (Cout, Cin, K, K) -> (Cout, (kh, kw, ci)) to match
    # the im2col row ordering used in the kernel.
    w_flat = jnp.transpose(w_oihw, (0, 2, 3, 1)).reshape(Cout, KKC)

    # Precomputed 0/1 validity mask per tap: covers both H- and W-edge zero padding,
    # so the kernel needs no in-kernel padding buffer and no per-tap compare chains.
    hh, ww = np.meshgrid(np.arange(H), np.arange(W), indexing="ij")
    masks_np = np.empty((K * K, HW), np.float32)
    for kh in range(K):
        for kw in range(K):
            dh, dw = kh - pad, kw - pad
            valid = (hh + dh >= 0) & (hh + dh < H) & (ww + dw >= 0) & (ww + dw < W)
            masks_np[kh * K + kw] = valid.reshape(-1).astype(np.float32)
    masks = jnp.asarray(masks_np)

    kernel = functools.partial(_make_dense_kernel, H=H, W=W, Cin=Cin, Cout=Cout,
                               K=K, pad=pad, n_local=n_local)

    out_flat = pl.pallas_call(
        kernel,
        out_shape=jax.ShapeDtypeStruct((N, Cin + Cout, HW), x_nchw.dtype),
        grid=(G,),
        in_specs=[
            pl.BlockSpec((n_local, Cin, HW), lambda g: (g, 0, 0)),
            pl.BlockSpec((Cout, KKC), lambda g: (0, 0)),    # constant -> VMEM-resident
            pl.BlockSpec((K * K, HW), lambda g: (0, 0)),    # constant -> VMEM-resident
        ],
        out_specs=pl.BlockSpec((n_local, Cin + Cout, HW), lambda g: (g, 0, 0)),
        compiler_params=pltpu.CompilerParams(
            dimension_semantics=("parallel",)),             # split across TCs on v7x
    )(x_flat, w_flat, masks)

    # Free reshape back to NCHW.
    return out_flat.reshape(N, Cin + Cout, H, W)


if __name__ == "__main__":
    # Small shapes consistent with the module: N=2, nChannels=4, H=W=16,
    # growthRate=8, kernel_size=3.
    N, Cin, H, W = 2, 4, 16, 16
    Cout, K = 8, 3

    key = jax.random.PRNGKey(0)
    kx, kw = jax.random.split(key)
    x = jax.random.normal(kx, (N, Cin, H, W), dtype=jnp.float32)
    w = jax.random.normal(kw, (Cout, Cin, K, K), dtype=jnp.float32) * 0.1

    out = jax.jit(make_dense_forward)(x, w)
    out = jax.block_until_ready(out)
    assert out.shape == (N, Cin + Cout, H, W), out.shape

    # Reference: full-precision lax conv + ReLU + channel concat.
    pad = (K - 1) // 2
    ref_conv = jax.lax.conv_general_dilated(
        x, w, window_strides=(1, 1), padding=((pad, pad), (pad, pad)),
        dimension_numbers=("NCHW", "OIHW", "NCHW"),
        precision=jax.lax.Precision.HIGHEST)
    ref = jnp.concatenate([x, jnp.maximum(ref_conv, 0.0)], axis=1)

    assert jnp.allclose(out[:, :Cin], x), "passthrough channels mismatch"
    assert jnp.allclose(out, ref, atol=1e-4, rtol=1e-4), (
        "max abs err = %g" % float(jnp.max(jnp.abs(out - ref))))

    print("KERNEL_OK")
</pallas_src>

<mosaic_0001>
module attributes {stable_mosaic.version = 11 : i64} {
  func.func @_make_dense_kernel(%arg0: i32, %arg1: memref<2x4x256xf32, #tpu.memory_space<vmem>>, %arg2: memref<8x36xf32, #tpu.memory_space<vmem>>, %arg3: memref<9x256xf32, #tpu.memory_space<vmem>>, %arg4: memref<2x12x256xf32, #tpu.memory_space<vmem>>) attributes {dimension_semantics = [#tpu.dimension_semantics<parallel>], iteration_bounds = array<i64: 1>, scalar_prefetch = 0 : i64, scratch_operands = 0 : i64, tpu.core_type = #tpu.core_type<tc>, window_params = [{transform_indices = @transform_0, window_bounds = array<i64: 2, 4, 256>}, {pipeline_mode = #tpu.pipeline_mode<synchronous>, transform_indices = @transform_1, window_bounds = array<i64: 8, 36>}, {pipeline_mode = #tpu.pipeline_mode<synchronous>, transform_indices = @transform_2, window_bounds = array<i64: 9, 256>}, {transform_indices = @transform_3, window_bounds = array<i64: 2, 12, 256>}]} {
    %c0 = arith.constant 0 : index
    %c0_0 = arith.constant 0 : index
    %0 = vector.load %arg2[%c0, %c0_0] : memref<8x36xf32, #tpu.memory_space<vmem>>, vector<8x36xf32>
    %c0_1 = arith.constant 0 : index
    %c0_2 = arith.constant 0 : index
    %1 = vector.load %arg3[%c0_1, %c0_2] : memref<9x256xf32, #tpu.memory_space<vmem>>, vector<9x256xf32>
    %c0_3 = arith.constant 0 : index
    %c0_4 = arith.constant 0 : index
    %c0_5 = arith.constant 0 : index
    %2 = vector.load %arg1[%c0_3, %c0_4, %c0_5] : memref<2x4x256xf32, #tpu.memory_space<vmem>>, vector<1x4x256xf32>
    %3 = vector.shape_cast %2 : vector<1x4x256xf32> to vector<4x256xf32>
    %c17_i32 = arith.constant 17 : i32
    %4 = tpu.dynamic_rotate %3 by %c17_i32 dim 1 : vector<4x256xf32>, i32 -> vector<4x256xf32>
    %5 = vector.extract_strided_slice %1 {offsets = [0, 0], sizes = [1, 256], strides = [1, 1]} : vector<9x256xf32> to vector<1x256xf32>
    %6 = vector.broadcast %5 : vector<1x256xf32> to vector<4x256xf32>
    %7 = arith.mulf %4, %6 : vector<4x256xf32>
    %c16_i32 = arith.constant 16 : i32
    %8 = tpu.dynamic_rotate %3 by %c16_i32 dim 1 : vector<4x256xf32>, i32 -> vector<4x256xf32>
    %9 = vector.extract_strided_slice %1 {offsets = [1, 0], sizes = [1, 256], strides = [1, 1]} : vector<9x256xf32> to vector<1x256xf32>
    %10 = vector.broadcast %9 : vector<1x256xf32> to vector<4x256xf32>
    %11 = arith.mulf %8, %10 : vector<4x256xf32>
    %c15_i32 = arith.constant 15 : i32
    %12 = tpu.dynamic_rotate %3 by %c15_i32 dim 1 : vector<4x256xf32>, i32 -> vector<4x256xf32>
    %13 = vector.extract_strided_slice %1 {offsets = [2, 0], sizes = [1, 256], strides = [1, 1]} : vector<9x256xf32> to vector<1x256xf32>
    %14 = vector.broadcast %13 : vector<1x256xf32> to vector<4x256xf32>
    %15 = arith.mulf %12, %14 : vector<4x256xf32>
    %c1_i32 = arith.constant 1 : i32
    %16 = tpu.dynamic_rotate %3 by %c1_i32 dim 1 : vector<4x256xf32>, i32 -> vector<4x256xf32>
    %17 = vector.extract_strided_slice %1 {offsets = [3, 0], sizes = [1, 256], strides = [1, 1]} : vector<9x256xf32> to vector<1x256xf32>
    %18 = vector.broadcast %17 : vector<1x256xf32> to vector<4x256xf32>
    %19 = arith.mulf %16, %18 : vector<4x256xf32>
    %c255_i32 = arith.constant 255 : i32
    %20 = tpu.dynamic_rotate %3 by %c255_i32 dim 1 : vector<4x256xf32>, i32 -> vector<4x256xf32>
    %21 = vector.extract_strided_slice %1 {offsets = [5, 0], sizes = [1, 256], strides = [1, 1]} : vector<9x256xf32> to vector<1x256xf32>
    %22 = vector.broadcast %21 : vector<1x256xf32> to vector<4x256xf32>
    %23 = arith.mulf %20, %22 : vector<4x256xf32>
    %c241_i32 = arith.constant 241 : i32
    %24 = tpu.dynamic_rotate %3 by %c241_i32 dim 1 : vector<4x256xf32>, i32 -> vector<4x256xf32>
    %25 = vector.extract_strided_slice %1 {offsets = [6, 0], sizes = [1, 256], strides = [1, 1]} : vector<9x256xf32> to vector<1x256xf32>
    %26 = vector.broadcast %25 : vector<1x256xf32> to vector<4x256xf32>
    %27 = arith.mulf %24, %26 : vector<4x256xf32>
    %c240_i32 = arith.constant 240 : i32
    %28 = tpu.dynamic_rotate %3 by %c240_i32 dim 1 : vector<4x256xf32>, i32 -> vector<4x256xf32>
    %29 = vector.extract_strided_slice %1 {offsets = [7, 0], sizes = [1, 256], strides = [1, 1]} : vector<9x256xf32> to vector<1x256xf32>
    %30 = vector.broadcast %29 : vector<1x256xf32> to vector<4x256xf32>
    %31 = arith.mulf %28, %30 : vector<4x256xf32>
    %c239_i32 = arith.constant 239 : i32
    %32 = tpu.dynamic_rotate %3 by %c239_i32 dim 1 : vector<4x256xf32>, i32 -> vector<4x256xf32>
    %33 = vector.extract_strided_slice %1 {offsets = [8, 0], sizes = [1, 256], strides = [1, 1]} : vector<9x256xf32> to vector<1x256xf32>
    %34 = vector.broadcast %33 : vector<1x256xf32> to vector<4x256xf32>
    %35 = arith.mulf %32, %34 : vector<4x256xf32>
    %36 = tpu.concatenate %7, %11, %15, %19, %3, %23, %27, %31, %35 in 0 : vector<4x256xf32>, vector<4x256xf32>, vector<4x256xf32>, vector<4x256xf32>, vector<4x256xf32>, vector<4x256xf32>, vector<4x256xf32>, vector<4x256xf32>, vector<4x256xf32> -> vector<36x256xf32>
    %cst = arith.constant dense<0.000000e+00> : vector<8x256xf32>
    %37 = tpu.matmul %0, %36, %cst {dimension_numbers = #tpu.dot_dimension_numbers<[1], [0], [0], [1], [0, 0, 1, 1], [], []>} : vector<8x36xf32>, vector<36x256xf32>, vector<8x256xf32> -> vector<8x256xf32>
    %cst_6 = arith.constant 0.000000e+00 : f32
    %38 = vector.broadcast %cst_6 : f32 to vector<8x256xf32>
    %39 = arith.maximumf %37, %38 : vector<8x256xf32>
    %40 = tpu.concatenate %3, %39 in 0 : vector<4x256xf32>, vector<8x256xf32> -> vector<12x256xf32>
    %c1 = arith.constant 1 : index
    %c0_7 = arith.constant 0 : index
    %c0_8 = arith.constant 0 : index
    %41 = vector.load %arg1[%c1, %c0_7, %c0_8] : memref<2x4x256xf32, #tpu.memory_space<vmem>>, vector<1x4x256xf32>
    %42 = vector.shape_cast %41 : vector<1x4x256xf32> to vector<4x256xf32>
    %c17_i32_9 = arith.constant 17 : i32
    %43 = tpu.dynamic_rotate %42 by %c17_i32_9 dim 1 : vector<4x256xf32>, i32 -> vector<4x256xf32>
    %44 = vector.extract_strided_slice %1 {offsets = [0, 0], sizes = [1, 256], strides = [1, 1]} : vector<9x256xf32> to vector<1x256xf32>
    %45 = vector.broadcast %44 : vector<1x256xf32> to vector<4x256xf32>
    %46 = arith.mulf %43, %45 : vector<4x256xf32>
    %c16_i32_10 = arith.constant 16 : i32
    %47 = tpu.dynamic_rotate %42 by %c16_i32_10 dim 1 : vector<4x256xf32>, i32 -> vector<4x256xf32>
    %48 = vector.extract_strided_slice %1 {offsets = [1, 0], sizes = [1, 256], strides = [1, 1]} : vector<9x256xf32> to vector<1x256xf32>
    %49 = vector.broadcast %48 : vector<1x256xf32> to vector<4x256xf32>
    %50 = arith.mulf %47, %49 : vector<4x256xf32>
    %c15_i32_11 = arith.constant 15 : i32
    %51 = tpu.dynamic_rotate %42 by %c15_i32_11 dim 1 : vector<4x256xf32>, i32 -> vector<4x256xf32>
    %52 = vector.extract_strided_slice %1 {offsets = [2, 0], sizes = [1, 256], strides = [1, 1]} : vector<9x256xf32> to vector<1x256xf32>
    %53 = vector.broadcast %52 : vector<1x256xf32> to vector<4x256xf32>
    %54 = arith.mulf %51, %53 : vector<4x256xf32>
    %c1_i32_12 = arith.constant 1 : i32
    %55 = tpu.dynamic_rotate %42 by %c1_i32_12 dim 1 : vector<4x256xf32>, i32 -> vector<4x256xf32>
    %56 = vector.extract_strided_slice %1 {offsets = [3, 0], sizes = [1, 256], strides = [1, 1]} : vector<9x256xf32> to vector<1x256xf32>
    %57 = vector.broadcast %56 : vector<1x256xf32> to vector<4x256xf32>
    %58 = arith.mulf %55, %57 : vector<4x256xf32>
    %c255_i32_13 = arith.constant 255 : i32
    %59 = tpu.dynamic_rotate %42 by %c255_i32_13 dim 1 : vector<4x256xf32>, i32 -> vector<4x256xf32>
    %60 = vector.extract_strided_slice %1 {offsets = [5, 0], sizes = [1, 256], strides = [1, 1]} : vector<9x256xf32> to vector<1x256xf32>
    %61 = vector.broadcast %60 : vector<1x256xf32> to vector<4x256xf32>
    %62 = arith.mulf %59, %61 : vector<4x256xf32>
    %c241_i32_14 = arith.constant 241 : i32
    %63 = tpu.dynamic_rotate %42 by %c241_i32_14 dim 1 : vector<4x256xf32>, i32 -> vector<4x256xf32>
    %64 = vector.extract_strided_slice %1 {offsets = [6, 0], sizes = [1, 256], strides = [1, 1]} : vector<9x256xf32> to vector<1x256xf32>
    %65 = vector.broadcast %64 : vector<1x256xf32> to vector<4x256xf32>
    %66 = arith.mulf %63, %65 : vector<4x256xf32>
    %c240_i32_15 = arith.constant 240 : i32
    %67 = tpu.dynamic_rotate %42 by %c240_i32_15 dim 1 : vector<4x256xf32>, i32 -> vector<4x256xf32>
    %68 = vector.extract_strided_slice %1 {offsets = [7, 0], sizes = [1, 256], strides = [1, 1]} : vector<9x256xf32> to vector<1x256xf32>
    %69 = vector.broadcast %68 : vector<1x256xf32> to vector<4x256xf32>
    %70 = arith.mulf %67, %69 : vector<4x256xf32>
    %c239_i32_16 = arith.constant 239 : i32
    %71 = tpu.dynamic_rotate %42 by %c239_i32_16 dim 1 : vector<4x256xf32>, i32 -> vector<4x256xf32>
    %72 = vector.extract_strided_slice %1 {offsets = [8, 0], sizes = [1, 256], strides = [1, 1]} : vector<9x256xf32> to vector<1x256xf32>
    %73 = vector.broadcast %72 : vector<1x256xf32> to vector<4x256xf32>
    %74 = arith.mulf %71, %73 : vector<4x256xf32>
    %75 = tpu.concatenate %46, %50, %54, %58, %42, %62, %66, %70, %74 in 0 : vector<4x256xf32>, vector<4x256xf32>, vector<4x256xf32>, vector<4x256xf32>, vector<4x256xf32>, vector<4x256xf32>, vector<4x256xf32>, vector<4x256xf32>, vector<4x256xf32> -> vector<36x256xf32>
    %cst_17 = arith.constant dense<0.000000e+00> : vector<8x256xf32>
    %76 = tpu.matmul %0, %75, %cst_17 {dimension_numbers = #tpu.dot_dimension_numbers<[1], [0], [0], [1], [0, 0, 1, 1], [], []>} : vector<8x36xf32>, vector<36x256xf32>, vector<8x256xf32> -> vector<8x256xf32>
    %cst_18 = arith.constant 0.000000e+00 : f32
    %77 = vector.broadcast %cst_18 : f32 to vector<8x256xf32>
    %78 = arith.maximumf %76, %77 : vector<8x256xf32>
    %79 = tpu.concatenate %42, %78 in 0 : vector<4x256xf32>, vector<8x256xf32> -> vector<12x256xf32>
    %80 = vector.shape_cast %40 : vector<12x256xf32> to vector<1x12x256xf32>
    %81 = vector.shape_cast %79 : vector<12x256xf32> to vector<1x12x256xf32>
    %82 = tpu.concatenate %80, %81 in 0 : vector<1x12x256xf32>, vector<1x12x256xf32> -> vector<2x12x256xf32>
    %c0_19 = arith.constant 0 : index
    %c0_20 = arith.constant 0 : index
    %c0_21 = arith.constant 0 : index
    %83 = vector.load %arg4[%c0_19, %c0_20, %c0_21] : memref<2x12x256xf32, #tpu.memory_space<vmem>>, vector<2x12x256xf32>
    tpu.vector_store %arg4[%c0_19, %c0_20, %c0_21], %82 {strides = array<i32>} : memref<2x12x256xf32, #tpu.memory_space<vmem>>, vector<2x12x256xf32>,
    return
  }
  func.func @transform_0(%arg0: i32) -> (i32, i32, i32) {
    %c0_i32 = arith.constant 0 : i32
    %c0_i32_0 = arith.constant 0 : i32
    %c0_i32_1 = arith.constant 0 : i32
    return %arg0, %c0_i32, %c0_i32_0 : i32, i32, i32
  }
  func.func @transform_1(%arg0: i32) -> (i32, i32) {
    %c0_i32 = arith.constant 0 : i32
    %c0_i32_0 = arith.constant 0 : i32
    %c0_i32_1 = arith.constant 0 : i32
    return %c0_i32, %c0_i32_0 : i32, i32
  }
  func.func @transform_2(%arg0: i32) -> (i32, i32) {
    %c0_i32 = arith.constant 0 : i32
    %c0_i32_0 = arith.constant 0 : i32
    %c0_i32_1 = arith.constant 0 : i32
    return %c0_i32, %c0_i32_0 : i32, i32
  }
  func.func @transform_3(%arg0: i32) -> (i32, i32, i32) {
    %c0_i32 = arith.constant 0 : i32
    %c0_i32_0 = arith.constant 0 : i32
    %c0_i32_1 = arith.constant 0 : i32
    return %arg0, %c0_i32, %c0_i32_0 : i32, i32, i32
  }
}

</mosaic_0001>

<bundles_post_ra>
// kernel: make_dense_forward.1
= control target key start
LH: loop header
LB: loop body
LE: loop exit
PB: predicated region body
PF: predicated region fallthrough
CT: control target
= control target key end

     0   :  { %s521_s14 = smov 1   ;;  %s522_s15 = smov 16   ;;  %v528_v4 = vmov 0.0   ;;  %v27_v7 = vlaneseq  ;;  %vm185_vm4 = vcmask 1043456   ;;  %vm194_vm9 = vcmask 293888   ;;  %s772_s0 = inlined_call_operand.vmem [shape: f32[2,4,256], index: 0, kind: input, shape index: {}]   ;;  %s773_s2 = inlined_call_operand.vmem [shape: f32[9,256], index: 2, kind: input, shape index: {}]   ;;  %s774_s1 = inlined_call_operand.vmem [shape: f32[8,36], index: 1, kind: input, shape index: {}]   ;;  %s775_s3 = inlined_call_operand.vmem [shape: f32[2,12,256], index: 3, kind: output, shape index: {}]  }
   0x1   :  { %v553_v0 = vld [vmem:[%s772_s0] sm:$0xff]  ;;  %v564_v2 = vld [vmem:[%s772_s0 + $0x8] sm:$0xff]  ;;  %s523_s18 = smov 17   ;;  %s524_s0 = smov 15   ;;  %268 = vmatprep.mubr.f32.mxu0 %v528_v4  ;;  %456 = vmatprep.mubr.f32.mxu1 %v528_v4 }
   0x2   :  { %76 = vrot.lane.b32.xlu1 %v553_v0, %s521_s14  ;;  %42 = vrot.lane.b32.xlu0 %v553_v0, %s522_s15  ;;  %v559_v1 = vcombine.high %v553_v0, %v553_v0  ;;  %v570_v3 = vcombine.high %v564_v2, %v564_v2  ;;  %s525_s19 = smov 127   ;;  %s526_s20 = smov 112   ;;  %v600_v10 = vshrl.u32 %v27_v7, 7  ;;  %v602_v11 = vand.u32 127, %v27_v7  ;;  %v609_v16 = vld [vmem:[%s773_s2] sm:$0xff]  ;;  %v614_v17 = vld [vmem:[%s773_s2 + $0x8] sm:$0xff] }
   0x3   :  { %s527_s21 = smov 113   ;;  %s529_s22 = smov 111  }
   0x4   :  { %v85_v14 = vsub.s32 3, %v600_v10  ;;  %v51_v15 = vsub.s32 1, %v600_v10  ;;  %vm80_vm0 = vcmp.lt.s32.totalorder %v602_v11, 1  ;;  %vm46_vm1 = vcmp.lt.s32.totalorder %v602_v11, 16 }
   0x5   :  { %v34_v20 = vsub.s32 0, %v600_v10  ;;  %vm29_vm2 = vcmp.lt.s32.totalorder %v602_v11, 17  ;;  %v68_v27 = vsub.s32 2, %v600_v10  ;;  %vm63_vm3 = vcmp.lt.s32.totalorder %v602_v11, 15 }
   0x6   :  { %78 = vrot.lane.b32.xlu1 %v559_v1, %s521_s14  ;;  %44 = vrot.lane.b32.xlu0 %v559_v1, %s522_s15  ;;  %v86_v21 = vrot.slane %v609_v16, %v85_v14  ;;  %v90_v22 = vrot.slane %v614_v17, %v85_v14  ;;  %v52_v23 = vrot.slane %v609_v16, %v51_v15  ;;  %vm97_vm5 = vcmp.lt.s32.totalorder %v602_v11, 127 }
   0x7   :  { %v56_v26 = vrot.slane %v614_v17, %v51_v15  ;;  %v35_v31 = vrot.slane %v609_v16, %v34_v20  ;;  %v39_v32 = vrot.slane %v614_v17, %v34_v20  ;;  %v69_v40 = vrot.slane %v609_v16, %v68_v27 }
   0x8   :  { %v73_v41 = vrot.slane %v614_v17, %v68_v27  ;;  %vm131_vm6 = vcmp.lt.s32.totalorder %v602_v11, 112  ;;  %vm114_vm7 = vcmp.lt.s32.totalorder %v602_v11, 113  ;;  %vm148_vm8 = vcmp.lt.s32.totalorder %v602_v11, 111 }
   0xa   :  { %300 = vrot.lane.b32.xlu1 %v570_v3, %s522_s15  ;;  %298 = vrot.lane.b32.xlu0 %v564_v2, %s522_s15 }
   0xe   :  { %316 = vrot.lane.b32.xlu1 %v570_v3, %s521_s14  ;;  %314 = vrot.lane.b32.xlu0 %v564_v2, %s521_s14 }
  0x12   :  { %25 = vrot.lane.b32.xlu1 %v559_v1, %s523_s18  ;;  %23 = vrot.lane.b32.xlu0 %v553_v0, %s523_s18 }
  0x16   :  { %61 = vrot.lane.b32.xlu1 %v559_v1, %s524_s0  ;;  %59 = vrot.lane.b32.xlu0 %v553_v0, %s524_s0 }
  0x1a   :  { %292 = vrot.lane.b32.xlu1 %v570_v3, %s523_s18  ;;  %290 = vrot.lane.b32.xlu0 %v564_v2, %s523_s18 }
  0x1e   :  { %308 = vrot.lane.b32.xlu1 %v570_v3, %s524_s0  ;;  %306 = vrot.lane.b32.xlu0 %v564_v2, %s524_s0 }
  0x22   :  { %95 = vrot.lane.b32.xlu1 %v559_v1, %s525_s19  ;;  %93 = vrot.lane.b32.xlu0 %v553_v0, %s525_s19 }
  0x26   :  { %129 = vrot.lane.b32.xlu1 %v559_v1, %s526_s20  ;;  %127 = vrot.lane.b32.xlu0 %v553_v0, %s526_s20 }
  0x2a   :  { %324 = vrot.lane.b32.xlu1 %v570_v3, %s525_s19  ;;  %322 = vrot.lane.b32.xlu0 %v564_v2, %s525_s19 }
  0x2e   :  { %340 = vrot.lane.b32.xlu1 %v570_v3, %s526_s20  ;;  %338 = vrot.lane.b32.xlu0 %v564_v2, %s526_s20 }
  0x32   :  { %112 = vrot.lane.b32.xlu1 %v559_v1, %s527_s21  ;;  %110 = vrot.lane.b32.xlu0 %v553_v0, %s527_s21 }
  0x36   :  { %332 = vrot.lane.b32.xlu1 %v570_v3, %s527_s21  ;;  %330 = vrot.lane.b32.xlu0 %v564_v2, %s527_s21 }
  0x3a   :  { %146 = vrot.lane.b32.xlu1 %v559_v1, %s529_s22  ;;  %144 = vrot.lane.b32.xlu0 %v553_v0, %s529_s22 }
  0x3e   :  { %348 = vrot.lane.b32.xlu1 %v570_v3, %s529_s22  ;;  %346 = vrot.lane.b32.xlu0 %v564_v2, %s529_s22 }
  0x74   :  { %v77_v5 = vpop.permute.xlu1 %76  ;;  %v43_v6 = vpop.permute.xlu0 %42 }
  0x78   :  { %v79_v8 = vpop.permute.xlu1 %78  ;;  %v45_v9 = vpop.permute.xlu0 %44 }
  0x79   :  { %v81_v24 = vsel %vm80_vm0, %v77_v5, %v79_v8  ;;  %v82_v25 = vsel %vm80_vm0, %v79_v8, %v77_v5  ;;  %v47_v28 = vsel %vm46_vm1, %v43_v6, %v45_v9  ;;  %v48_v29 = vsel %vm46_vm1, %v45_v9, %v43_v6 }
  0x7a   :  { %v91_v34 = vmul.f32 %v86_v21, %v82_v25  ;;  %v92_v35 = vmul.f32 %v90_v22, %v81_v24  ;;  %v57_v38 = vmul.f32 %v52_v23, %v48_v29  ;;  %v58_v39 = vmul.f32 %v56_v26, %v47_v28 }
  0x7c   :  { %v301_v12 = vpop.permute.xlu1 %300  ;;  %v299_v13 = vpop.permute.xlu0 %298  ;;  %v169_v48 = vrot.slane %v91_v34, 4  ;;  %v170_v49 = vrot.slane %v92_v35, 4  ;;  %v163_v52 = vrot.slane %v57_v38, 4  ;;  %v164_v53 = vrot.slane %v58_v39, 4 }
  0x7d   :  { %v302_v42 = vsel %vm46_vm1, %v299_v13, %v301_v12  ;;  %v303_v43 = vsel %vm46_vm1, %v301_v12, %v299_v13  ;;  %v136_v39 = vsub.s32 7, %v600_v10 }
  0x7e   :  { %v304_v56 = vmul.f32 %v303_v43, %v52_v23  ;;  %v305_v57 = vmul.f32 %v302_v42, %v56_v26 }
  0x80   :  { %v317_v18 = vpop.permute.xlu1 %316  ;;  %v315_v19 = vpop.permute.xlu0 %314  ;;  %v356_v20 = vrot.slane %v304_v56, 4  ;;  %v357_v23 = vrot.slane %v305_v57, 4 }
  0x81   :  { %v318_v58 = vsel %vm80_vm0, %v315_v19, %v317_v18  ;;  %v319_v59 = vsel %vm80_vm0, %v317_v18, %v315_v19 }
  0x82   :  { %v320_v12 = vmul.f32 %v319_v59, %v86_v21  ;;  %v321_v13 = vmul.f32 %v318_v58, %v90_v22 }
  0x84   :  { %v26_v30 = vpop.permute.xlu1 %25  ;;  %v24_v33 = vpop.permute.xlu0 %23  ;;  %v362_v26 = vrot.slane %v320_v12, 4  ;;  %v363_v27 = vrot.slane %v321_v13, 4 }
  0x85   :  { %v30_v36 = vsel %vm29_vm2, %v24_v33, %v26_v30  ;;  %v31_v37 = vsel %vm29_vm2, %v26_v30, %v24_v33 }
  0x86   :  { %v40_v44 = vmul.f32 %v35_v31, %v31_v37  ;;  %v41_v45 = vmul.f32 %v39_v32, %v30_v36  ;;  %v102_v36 = vsub.s32 5, %v600_v10 }
  0x88   :  { %v62_v46 = vpop.permute.xlu1 %61  ;;  %v60_v47 = vpop.permute.xlu0 %59  ;;  %v187_v62 = vsel %vm185_vm4, %v41_v45, %v164_v53  ;;  %v186_v4 = vsel %vm185_vm4, %v40_v44, %v163_v52 }
  0x89   :  { %v64_v50 = vsel %vm63_vm3, %v60_v47, %v62_v46  ;;  %v65_v51 = vsel %vm63_vm3, %v62_v46, %v60_v47  ;;  %v137_v46 = vrot.slane %v609_v16, %v136_v39  ;;  %v141_v47 = vrot.slane %v614_v17, %v136_v39 }
  0x8a   :  { %v74_v54 = vmul.f32 %v69_v40, %v65_v51  ;;  %v75_v55 = vmul.f32 %v73_v41, %v64_v50  ;;  %v119_v50 = vsub.s32 6, %v600_v10 }
  0x8c   :  { %v293_v60 = vpop.permute.xlu1 %292  ;;  %v291_v61 = vpop.permute.xlu0 %290  ;;  %v189_v63 = vsel %vm185_vm4, %v75_v55, %v170_v49  ;;  %v188_v5 = vsel %vm185_vm4, %v74_v54, %v169_v48  ;;  %v120_v59 = vrot.slane %v609_v16, %v119_v50 }
  0x8d   :  { %v294_v6 = vsel %vm29_vm2, %v291_v61, %v293_v60  ;;  %v295_v7 = vsel %vm29_vm2, %v293_v60, %v291_v61  ;;  %v494_v8 = vpack.c.bf16 %v189_v63, %v187_v62  ;;  %v496_v9 = vpack.c.bf16 %v188_v5, %v186_v4 }
  0x8e   :  { %v296_v14 = vmul.f32 %v295_v7, %v35_v31  ;;  %v297_v15 = vmul.f32 %v294_v6, %v39_v32  ;;  %v124_v60 = vrot.slane %v614_v17, %v119_v50 }
  0x8f   :  { %495 = vmatprep.subr.bf16.mxu0 %v494_v8 }
  0x90   :  { %v309_v18 = vpop.permute.xlu1 %308  ;;  %497 = vmatpush1.bf16.msra.mxu0 %v496_v9  ;;  %v307_v19 = vpop.permute.xlu0 %306  ;;  %v379_v30 = vsel %vm185_vm4, %v297_v15, %v357_v23  ;;  %v378_v32 = vsel %vm185_vm4, %v296_v14, %v356_v20 }
  0x91   :  { %v310_v24 = vsel %vm63_vm3, %v307_v19, %v309_v18  ;;  %v311_v25 = vsel %vm63_vm3, %v309_v18, %v307_v19 }
  0x92   :  { %v312_v28 = vmul.f32 %v311_v25, %v69_v40  ;;  %v313_v29 = vmul.f32 %v310_v24, %v73_v41  ;;  %v103_v40 = vrot.slane %v609_v16, %v102_v36  ;;  %v107_v41 = vrot.slane %v614_v17, %v102_v36 }
  0x94   :  { %v96_v21 = vpop.permute.xlu1 %95  ;;  %v94_v22 = vpop.permute.xlu0 %93  ;;  %v381_v31 = vsel %vm185_vm4, %v313_v29, %v363_v27  ;;  %v380_v33 = vsel %vm185_vm4, %v312_v28, %v362_v26 }
  0x95   :  { %v502_v34 = vpack.c.bf16 %v381_v31, %v379_v30  ;;  %v504_v35 = vpack.c.bf16 %v380_v33, %v378_v32  ;;  %v98_v42 = vsel %vm97_vm5, %v94_v22, %v96_v21  ;;  %v99_v43 = vsel %vm97_vm5, %v96_v21, %v94_v22 }
  0x96   :  { %v108_v51 = vmul.f32 %v103_v40, %v98_v42  ;;  %v109_v52 = vmul.f32 %v107_v41, %v99_v43 }
  0x97   :  { %503 = vmatprep.subr.bf16.mxu1 %v502_v34  ;;  %v485_v34 = vld [vmem:[%s773_s2 + $0x10] ss:$0 sm:$0xff] }
  0x98   :  { %v130_v37 = vpop.permute.xlu1 %129  ;;  %505 = vmatpush1.bf16.msra.mxu1 %v504_v35  ;;  %v128_v38 = vpop.permute.xlu0 %127  ;;  %v175_v61 = vrot.slane %v108_v51, 4  ;;  %v176_v10 = vrot.slane %v109_v52, 4  ;;  %v486_v35 = vld [vmem:[%s773_s2 + $0x18] ss:$0 sm:$0xff] }
  0x99   :  { %v132_v48 = vsel %vm131_vm6, %v128_v38, %v130_v37  ;;  %v133_v49 = vsel %vm131_vm6, %v130_v37, %v128_v38 }
  0x9a   :  { %v142_v55 = vmul.f32 %v137_v46, %v132_v48  ;;  %v143_v56 = vmul.f32 %v141_v47, %v133_v49  ;;  %v191_v18 = vsel %vm185_vm4, %v559_v1, %v176_v10  ;;  %v190_v19 = vsel %vm185_vm4, %v553_v0, %v175_v61  ;;  %v14_v48 = vld [vmem:[%s774_s1] sm:$0xff] }
  0x9c   :  { %v325_v44 = vpop.permute.xlu1 %324  ;;  %v323_v45 = vpop.permute.xlu0 %322  ;;  %v181_v8 = vrot.slane %v142_v55, 4  ;;  %v182_v9 = vrot.slane %v143_v56, 4 }
  0x9d   :  { %v326_v57 = vsel %vm97_vm5, %v323_v45, %v325_v44  ;;  %v327_v58 = vsel %vm97_vm5, %v325_v44, %v323_v45 }
  0x9e   :  { %v328_v4 = vmul.f32 %v326_v57, %v103_v40  ;;  %v329_v5 = vmul.f32 %v327_v58, %v107_v41 }
  0xa0   :  { %v341_v53 = vpop.permute.xlu1 %340  ;;  %v339_v54 = vpop.permute.xlu0 %338  ;;  %v368_v20 = vrot.slane %v328_v4, 4  ;;  %v369_v23 = vrot.slane %v329_v5, 4 }
  0xa1   :  { %v342_v62 = vsel %vm131_vm6, %v339_v54, %v341_v53  ;;  %v343_v63 = vsel %vm131_vm6, %v341_v53, %v339_v54 }
  0xa2   :  { %v344_v17 = vmul.f32 %v342_v62, %v137_v46  ;;  %v345_v13 = vmul.f32 %v343_v63, %v141_v47  ;;  %v383_v38 = vsel %vm185_vm4, %v570_v3, %v369_v23  ;;  %v382_v40 = vsel %vm185_vm4, %v564_v2, %v368_v20 }
  0xa4   :  { %v113_v6 = vpop.permute.xlu1 %112  ;;  %v111_v7 = vpop.permute.xlu0 %110  ;;  %v374_v30 = vrot.slane %v344_v17, 4  ;;  %v375_v31 = vrot.slane %v345_v13, 4 }
  0xa5   :  { %v115_v12 = vsel %vm114_vm7, %v111_v7, %v113_v6  ;;  %v116_v16 = vsel %vm114_vm7, %v113_v6, %v111_v7 }
  0xa6   :  { %v125_v14 = vmul.f32 %v120_v59, %v115_v12  ;;  %v126_v15 = vmul.f32 %v124_v60, %v116_v16 }
  0xa8   :  { %v333_v24 = vpop.permute.xlu1 %332  ;;  %v331_v25 = vpop.permute.xlu0 %330  ;;  %v193_v26 = vsel %vm185_vm4, %v126_v15, %v182_v9  ;;  %v192_v27 = vsel %vm185_vm4, %v125_v14, %v181_v8 }
  0xa9   :  { %v334_v28 = vsel %vm114_vm7, %v331_v25, %v333_v24  ;;  %v335_v29 = vsel %vm114_vm7, %v333_v24, %v331_v25  ;;  %v498_v21 = vpack.c.bf16 %v193_v26, %v191_v18  ;;  %v500_v22 = vpack.c.bf16 %v192_v27, %v190_v19 }
  0xaa   :  { %v336_v32 = vmul.f32 %v334_v28, %v120_v59  ;;  %v337_v33 = vmul.f32 %v335_v29, %v124_v60 }
  0xab   :  { %499 = vmatprep.subr.bf16.mxu0 %v498_v21 }
  0xac   :  { %v147_v36 = vpop.permute.xlu1 %146  ;;  %501 = vmatpush1.bf16.msra.mxu0 %v500_v22  ;;  %v145_v37 = vpop.permute.xlu0 %144  ;;  %v385_v39 = vsel %vm185_vm4, %v337_v33, %v375_v31  ;;  %v384_v41 = vsel %vm185_vm4, %v336_v32, %v374_v30 }
  0xad   :  { %v149_v42 = vsel %vm148_vm8, %v145_v37, %v147_v36  ;;  %v150_v43 = vsel %vm148_vm8, %v147_v36, %v145_v37  ;;  %v506_v44 = vpack.c.bf16 %v385_v39, %v383_v38  ;;  %v508_v45 = vpack.c.bf16 %v384_v41, %v382_v40 }
  0xae   :  { %v159_v46 = vmul.f32 %v485_v34, %v149_v42  ;;  %v160_v47 = vmul.f32 %v486_v35, %v150_v43 }
  0xaf   :  { %507 = vmatprep.subr.bf16.mxu1 %v506_v44 }
  0xb0   :  { %v349_v49 = vpop.permute.xlu1 %348  ;;  %487 = vmatprep.subr.msk.mxu0 %vm185_vm4, %v160_v47  ;;  %509 = vmatpush1.bf16.msra.mxu1 %v508_v45  ;;  %v347_v50 = vpop.permute.xlu0 %346 }
  0xb1   :  { %v350_v51 = vsel %vm148_vm8, %v347_v50, %v349_v49  ;;  %v351_v52 = vsel %vm148_vm8, %v349_v49, %v347_v50  ;;  %488 = vmatpush1.msk.msra.mxu0 %vm185_vm4, %v159_v46 }
  0xb2   :  { %v352_v53 = vmul.f32 %v485_v34, %v350_v51  ;;  %v353_v54 = vmul.f32 %v486_v35, %v351_v52  ;;  %489 = vmatmul.mubr.msk.f32.vlgmr.msra.gmra.mrb[0].mxu0 %vm194_vm9, %v14_v48 }
  0xb4   :  { %491 = vmatprep.subr.msk.mxu1 %vm185_vm4, %v353_v54 }
  0xb5   :  { %492 = vmatpush1.msk.msra.mxu1 %vm185_vm4, %v352_v53 }
  0xb6   :  { %493 = vmatmul.mubr.msk.f32.vlgmr.msra.gmra.mrb[0].mxu1 %vm194_vm9, %v14_v48 }
 0x185   :  { %v270_v55 = vpop.f32.mrb[0].mxu0 }
 0x186   :  { %v275_v56 = vmax.f32 %v270_v55, 0.0  ;;  %v272_v57 = vpop.f32.mrb[1].mxu0 }
 0x187   :  { %v276_v58 = vmax.f32 %v272_v57, 0.0 }
 0x188   :  { %v279_v59 = vrot.slane %v275_v56, 4 }
 0x189   :  { %v280_v60 = vrot.slane %v276_v58, 4  ;;  %v458_v61 = vpop.f32.mrb[0].mxu1 }
 0x18a   :  { %v283_v11 = vsel %vm185_vm4, %v553_v0, %v279_v59  ;;  %475 = vst [vmem:[%s775_s3 + $0x10] sm:$0xf] %v279_v59  ;;  %v463_v10 = vmax.f32 %v458_v61, 0.0  ;;  %v460_v62 = vpop.f32.mrb[1].mxu1 }
 0x18b   :  { %473 = vst [vmem:[%s775_s3] sm:$0xff] %v283_v11  ;;  %v284_v63 = vsel %vm185_vm4, %v559_v1, %v280_v60  ;;  %476 = vst [vmem:[%s775_s3 + $0x18] sm:$0xf] %v280_v60  ;;  %v464_v4 = vmax.f32 %v460_v62, 0.0 }
 0x18c   :  { %474 = vst [vmem:[%s775_s3 + $0x8] sm:$0xff] %v284_v63  ;;  %v467_v0 = vrot.slane %v463_v10, 4 }
 0x18d   :  { %v468_v5 = vrot.slane %v464_v4, 4 }
 0x18e   :  { %v471_v6 = vsel %vm185_vm4, %v564_v2, %v467_v0  ;;  %479 = vst [vmem:[%s775_s3 + $0x30] sm:$0xf] %v467_v0 }
 0x18f   :  { %477 = vst [vmem:[%s775_s3 + $0x20] sm:$0xff] %v471_v6  ;;  %v472_v1 = vsel %vm185_vm4, %v570_v3, %v468_v5  ;;  %480 = vst [vmem:[%s775_s3 + $0x38] sm:$0xf] %v468_v5 }
 0x190   :  { %478 = vst [vmem:[%s775_s3 + $0x28] sm:$0xff] %v472_v1 }

</bundles_post_ra>
